<compile_context>
chip_gen: v7x
topology: tpu7x:2x2x1
jax: 0.10.0
libtpu: 0.0.40
codegen_flags: <defaults>
</compile_context>

<pallas_src>
import functools

import jax
import jax.numpy as jnp
from jax.experimental import pallas as pl
from jax.experimental.pallas import tpu as pltpu


def _gated_attn_kernel(x_ref, wab_ref, bab_ref, wc_ref, bc_ref, out_ref, *,
                       D, vpu_out, bf16_epilogue):
    """One row-tile of the gated attention head.

    x_ref:   (TN, L)  f32   -- streamed tile of the input (cast to bf16 here)
    wab_ref: (L, 2D)  bf16  -- [Wa | Wb] fused, VMEM-resident
    bab_ref: (1, 2D)  f32   -- [ba | bb]
    wc_ref:  (1, D) f32 (C==1, VPU path)  or  (D, C) bf16 (MXU path)
    bc_ref:  (1, C)   f32
    out_ref: (TN, C)  f32
    """
    # In-kernel f32 -> bf16 cast: the only HBM pass over x is the tile DMA.
    x = x_ref[...].astype(jnp.bfloat16)                               # (TN, L)
    # Single fused MXU gemm for both attention branches, f32 accumulation.
    h = jnp.dot(x, wab_ref[...],
                preferred_element_type=jnp.float32) + bab_ref[...]    # (TN, 2D)
    if bf16_epilogue:
        # v6e/v7x: VPU/EUP have bf16 paths -> halve the vreg/VMEM footprint
        # of the (TN, 2D) intermediate and double epilogue throughput.
        h = h.astype(jnp.bfloat16)
    a = jnp.tanh(h[:, :D])                                            # EUP
    b = jax.nn.sigmoid(h[:, D:])                                      # EUP
    gated = a * b                                                     # VPU

    if vpu_out:
        # C == 1: do the D-contraction on the VPU/XLU (mul + lane reduce);
        # an MXU gemm would pad the 1-column output to a full tile and waste
        # ~10% of MXU cycles per row tile on v5e/v7x.
        prod = gated.astype(jnp.float32) * wc_ref[...]                # (TN, D)
        out = jnp.sum(prod, axis=-1, keepdims=True) + bc_ref[...]     # (TN, 1)
    else:
        # C >= 2: keep the MXU gemm, f32 accumulation.
        out = jnp.dot(gated.astype(wc_ref.dtype), wc_ref[...],
                      preferred_element_type=jnp.float32) + bc_ref[...]
    out_ref[...] = out.astype(out_ref.dtype)


def prepare_attn_params(wa, ba, wb, bb, wc, bc):
    """One-time host-side weight prep (fusion + casts). Call once and reuse.

    wa: (L, D), ba: (D,)   -- attention_a Linear (weight pre-transposed)
    wb: (L, D), bb: (D,)   -- attention_b Linear (weight pre-transposed)
    wc: (D, C), bc: (C,)   -- attention_c Linear (weight pre-transposed)
    """
    L, D = wa.shape
    C = wc.shape[1]
    wab = jnp.concatenate([wa, wb], axis=1).astype(jnp.bfloat16)          # (L, 2D)
    bab = jnp.concatenate([ba, bb], axis=0).reshape(1, 2 * D).astype(jnp.float32)
    if C == 1:
        wc_p = wc.reshape(1, D).astype(jnp.float32)   # row vector, VPU path
    else:
        wc_p = wc.astype(jnp.bfloat16)                # (D, C), MXU path
    bc_p = bc.reshape(1, C).astype(jnp.float32)
    return wab, bab, wc_p, bc_p


def _device_kind():
    try:
        return jax.devices()[0].device_kind.lower()
    except Exception:
        return ""


def _choose_tile_n(N, tile_n):
    """Row-tile size: multiple of 8 (sublane) unless it covers the full array,
    keeping the grid >= 2 whenever possible (v7x megacore)."""
    tile_n = max(8, (tile_n // 8) * 8)
    if N <= 15:
        return N                                  # single full tile
    if N <= tile_n:
        # Split into >= 2 blocks so the "parallel" axis shards across both
        # TensorCores on v7x (a grid of 1 idles a core).
        return max(8, ((-(-N // 2)) + 7) // 8 * 8)
    return tile_n


def attn_net_gated(x, params, *, tile_n=1024, bf16_epilogue=None,
                   x_buffers=None, vmem_limit_bytes=48 * 1024 * 1024):
    """Forward pass of Attn_Net_Gated. Returns (A, x) like the PyTorch module.

    Args:
      x:      (N, L) float32
      params: output of prepare_attn_params(wa, ba, wb, bb, wc, bc)
      tile_n: max row-tile size for streaming x over the grid (multiple of 8).
    """
    wab, bab, wc_p, bc_p = params
    N, L = x.shape
    two_d = wab.shape[1]
    D = two_d // 2
    C = bc_p.shape[1]
    vpu_out = (C == 1)

    kind = _device_kind()
    if bf16_epilogue is None:
        bf16_epilogue = ("v6" in kind) or ("v7" in kind)   # f32 epilogue on v5e
    if x_buffers is None:
        x_buffers = 3 if "v6" in kind else 2               # v6e: HBM roofline

    TN = _choose_tile_n(N, tile_n)
    grid = (pl.cdiv(N, TN),)

    # x spec: streamed row tiles; optionally deepen the input pipeline.
    def _x_index(i):
        return (i, 0)
    x_spec = pl.BlockSpec((TN, L), _x_index)
    if x_buffers > 2 and grid[0] >= x_buffers and hasattr(pl, "Buffered"):
        try:
            x_spec = pl.BlockSpec((TN, L), _x_index,
                                  pipeline_mode=pl.Buffered(x_buffers))
        except TypeError:
            pass   # older jax: fall back to default double buffering

    kernel = functools.partial(_gated_attn_kernel, D=D, vpu_out=vpu_out,
                               bf16_epilogue=bf16_epilogue)

    x_itemsize = jnp.dtype(x.dtype).itemsize
    cost = pl.CostEstimate(
        flops=2 * N * L * two_d + 2 * N * D * C,
        transcendentals=3 * N * D,                 # tanh + (exp + recip) sigmoid
        bytes_accessed=(N * L * x_itemsize + wab.size * 2 + bab.size * 4
                        + wc_p.size * jnp.dtype(wc_p.dtype).itemsize
                        + bc_p.size * 4 + N * C * 4),
    )

    A = pl.pallas_call(
        kernel,
        out_shape=jax.ShapeDtypeStruct((N, C), x.dtype),
        grid=grid,
        in_specs=[
            x_spec,                                           # x: streamed tiles
            pl.BlockSpec((L, two_d), lambda i: (0, 0)),       # [Wa|Wb]: resident
            pl.BlockSpec((1, two_d), lambda i: (0, 0)),       # [ba|bb]: resident
            pl.BlockSpec(wc_p.shape, lambda i: (0, 0)),       # Wc: resident
            pl.BlockSpec((1, C), lambda i: (0, 0)),           # bc: resident
        ],
        out_specs=pl.BlockSpec((TN, C), lambda i: (i, 0)),
        compiler_params=pltpu.CompilerParams(
            dimension_semantics=("parallel",),                # megacore on v7x
            vmem_limit_bytes=vmem_limit_bytes,
        ),
        cost_estimate=cost,
    )(x, wab, bab, wc_p, bc_p)
    return A, x


def _ref_forward(x, wa, ba, wb, bb, wc, bc):
    a = jnp.tanh(x @ wa + ba)
    b = jax.nn.sigmoid(x @ wb + bb)
    return (a * b) @ wc + bc


if __name__ == "__main__":
    # Small shapes consistent with the module: L (input feats), D (hidden),
    # n_classes = 1. N picked so the grid splits into 2 blocks with a padded
    # last tile (40 rows -> tiles of 24).
    N, L, D, C = 40, 32, 16, 1

    key = jax.random.PRNGKey(0)
    kx, ka, kba, kb, kbb, kc, kbc = jax.random.split(key, 7)

    x = jax.random.normal(kx, (N, L), dtype=jnp.float32)
    # Deterministic synthetic parameters (not a checkpoint load).
    wa = jax.random.normal(ka, (L, D), dtype=jnp.float32) * 0.05
    ba = jax.random.normal(kba, (D,), dtype=jnp.float32) * 0.05
    wb = jax.random.normal(kb, (L, D), dtype=jnp.float32) * 0.05
    bb = jax.random.normal(kbb, (D,), dtype=jnp.float32) * 0.05
    wc = jax.random.normal(kc, (D, C), dtype=jnp.float32) * 0.05
    bc = jax.random.normal(kbc, (C,), dtype=jnp.float32) * 0.05

    params = prepare_attn_params(wa, ba, wb, bb, wc, bc)   # hoisted: done once
    A, x_out = attn_net_gated(x, params)
    jax.block_until_ready((A, x_out))

    # Correctness vs pure-JAX f32 reference (tolerance covers bf16 matmul
    # operands / optional bf16 epilogue; accumulation is f32).
    A_ref = _ref_forward(x, wa, ba, wb, bb, wc, bc)
    assert A.shape == (N, C)
    assert x_out.shape == (N, L)
    max_err = float(jnp.max(jnp.abs(A - A_ref)))
    assert jnp.allclose(A, A_ref, atol=2e-2, rtol=2e-2), max_err
    assert jnp.array_equal(x_out, x)

    # TODO(synk): dropout=True path (nn.Dropout(0.25) on each branch) is not
    # implemented; the module's default dropout=False forward is matched.
    print("KERNEL_OK")
</pallas_src>

<mosaic_0001>
module attributes {stable_mosaic.version = 11 : i64} {
  func.func @_gated_attn_kernel(%arg0: i32, %arg1: memref<24x32xf32, #tpu.memory_space<vmem>>, %arg2: memref<32x32xbf16, #tpu.memory_space<vmem>>, %arg3: memref<1x32xf32, #tpu.memory_space<vmem>>, %arg4: memref<1x16xf32, #tpu.memory_space<vmem>>, %arg5: memref<1x1xf32, #tpu.memory_space<vmem>>, %arg6: memref<24x1xf32, #tpu.memory_space<vmem>>) attributes {dimension_semantics = [#tpu.dimension_semantics<parallel>], iteration_bounds = array<i64: 2>, scalar_prefetch = 0 : i64, scratch_operands = 0 : i64, tpu.core_type = #tpu.core_type<tc>, window_params = [{transform_indices = @transform_0, window_bounds = array<i64: 24, 32>}, {pipeline_mode = #tpu.pipeline_mode<synchronous>, transform_indices = @transform_1, window_bounds = array<i64: 32, 32>}, {pipeline_mode = #tpu.pipeline_mode<synchronous>, transform_indices = @transform_2, window_bounds = array<i64: 1, 32>}, {pipeline_mode = #tpu.pipeline_mode<synchronous>, transform_indices = @transform_3, window_bounds = array<i64: 1, 16>}, {pipeline_mode = #tpu.pipeline_mode<synchronous>, transform_indices = @transform_4, window_bounds = array<i64: 1, 1>}, {transform_indices = @transform_5, window_bounds = array<i64: 24, 1>}]} {
    %c0 = arith.constant 0 : index
    %c0_0 = arith.constant 0 : index
    %0 = vector.load %arg1[%c0, %c0_0] : memref<24x32xf32, #tpu.memory_space<vmem>>, vector<24x32xf32>
    %1 = arith.truncf %0 : vector<24x32xf32> to vector<24x32xbf16>
    %c0_1 = arith.constant 0 : index
    %c0_2 = arith.constant 0 : index
    %2 = vector.load %arg2[%c0_1, %c0_2] : memref<32x32xbf16, #tpu.memory_space<vmem>>, vector<32x32xbf16>
    %cst = arith.constant dense<0.000000e+00> : vector<24x32xf32>
    %3 = tpu.matmul %1, %2, %cst {dimension_numbers = #tpu.dot_dimension_numbers<[1], [0], [0], [1], [0, 0, 1, 1], [], []>} : vector<24x32xbf16>, vector<32x32xbf16>, vector<24x32xf32> -> vector<24x32xf32>
    %c0_3 = arith.constant 0 : index
    %c0_4 = arith.constant 0 : index
    %4 = vector.load %arg3[%c0_3, %c0_4] : memref<1x32xf32, #tpu.memory_space<vmem>>, vector<1x32xf32>
    %5 = vector.broadcast %4 : vector<1x32xf32> to vector<24x32xf32>
    %6 = arith.addf %3, %5 : vector<24x32xf32>
    %7 = vector.extract_strided_slice %6 {offsets = [0, 0], sizes = [24, 16], strides = [1, 1]} : vector<24x32xf32> to vector<24x16xf32>
    %8 = math.tanh %7 : vector<24x16xf32>
    %9 = vector.extract_strided_slice %6 {offsets = [0, 16], sizes = [24, 16], strides = [1, 1]} : vector<24x32xf32> to vector<24x16xf32>
    %10 = arith.negf %9 : vector<24x16xf32>
    %11 = math.exp %10 : vector<24x16xf32>
    %cst_5 = arith.constant 1.000000e+00 : f32
    %12 = vector.broadcast %cst_5 : f32 to vector<24x16xf32>
    %13 = arith.addf %12, %11 : vector<24x16xf32>
    %14 = arith.divf %12, %13 : vector<24x16xf32>
    %15 = arith.mulf %8, %14 : vector<24x16xf32>
    %c0_6 = arith.constant 0 : index
    %c0_7 = arith.constant 0 : index
    %16 = vector.load %arg4[%c0_6, %c0_7] : memref<1x16xf32, #tpu.memory_space<vmem>>, vector<1x16xf32>
    %17 = vector.broadcast %16 : vector<1x16xf32> to vector<24x16xf32>
    %18 = arith.mulf %15, %17 : vector<24x16xf32>
    %cst_8 = arith.constant dense<0.000000e+00> : vector<24xf32>
    %19 = vector.multi_reduction <add>, %18, %cst_8 [1] : vector<24x16xf32> to vector<24xf32>
    %20 = vector.shape_cast %19 : vector<24xf32> to vector<24x1xf32>
    %c0_9 = arith.constant 0 : index
    %c0_10 = arith.constant 0 : index
    %21 = vector.load %arg5[%c0_9, %c0_10] : memref<1x1xf32, #tpu.memory_space<vmem>>, vector<1x1xf32>
    %22 = vector.broadcast %21 : vector<1x1xf32> to vector<24x1xf32>
    %23 = arith.addf %20, %22 : vector<24x1xf32>
    %c0_11 = arith.constant 0 : index
    %c0_12 = arith.constant 0 : index
    %24 = vector.load %arg6[%c0_11, %c0_12] : memref<24x1xf32, #tpu.memory_space<vmem>>, vector<24x1xf32>
    tpu.vector_store %arg6[%c0_11, %c0_12], %23 {strides = array<i32>} : memref<24x1xf32, #tpu.memory_space<vmem>>, vector<24x1xf32>,
    return
  }
  func.func @transform_0(%arg0: i32) -> (i32, i32) {
    %c0_i32 = arith.constant 0 : i32
    %c0_i32_0 = arith.constant 0 : i32
    return %arg0, %c0_i32 : i32, i32
  }
  func.func @transform_1(%arg0: i32) -> (i32, i32) {
    %c0_i32 = arith.constant 0 : i32
    %c0_i32_0 = arith.constant 0 : i32
    %c0_i32_1 = arith.constant 0 : i32
    return %c0_i32, %c0_i32_0 : i32, i32
  }
  func.func @transform_2(%arg0: i32) -> (i32, i32) {
    %c0_i32 = arith.constant 0 : i32
    %c0_i32_0 = arith.constant 0 : i32
    %c0_i32_1 = arith.constant 0 : i32
    return %c0_i32, %c0_i32_0 : i32, i32
  }
  func.func @transform_3(%arg0: i32) -> (i32, i32) {
    %c0_i32 = arith.constant 0 : i32
    %c0_i32_0 = arith.constant 0 : i32
    %c0_i32_1 = arith.constant 0 : i32
    return %c0_i32, %c0_i32_0 : i32, i32
  }
  func.func @transform_4(%arg0: i32) -> (i32, i32) {
    %c0_i32 = arith.constant 0 : i32
    %c0_i32_0 = arith.constant 0 : i32
    %c0_i32_1 = arith.constant 0 : i32
    return %c0_i32, %c0_i32_0 : i32, i32
  }
  func.func @transform_5(%arg0: i32) -> (i32, i32) {
    %c0_i32 = arith.constant 0 : i32
    %c0_i32_0 = arith.constant 0 : i32
    return %arg0, %c0_i32 : i32, i32
  }
}

</mosaic_0001>

<bundles_post_ra>
// kernel: tpu_custom_call.1
= control target key start
LH: loop header
LB: loop body
LE: loop exit
PB: predicated region body
PF: predicated region fallthrough
CT: control target
= control target key end

     0   :  { %s995_s0 = inlined_call_operand.vmem [shape: f32[40,32], index: 0, kind: input, shape index: {}]   ;;  %s996_s1 = inlined_call_operand.vmem [shape: bf16[32,32], index: 1, kind: input, shape index: {}]   ;;  %s997_s2 = inlined_call_operand.vmem [shape: f32[1,32], index: 2, kind: input, shape index: {}]   ;;  %s998_s3 = inlined_call_operand.vmem [shape: f32[1,16], index: 3, kind: input, shape index: {}]   ;;  %s999_s4 = inlined_call_operand.<no memory space> [shape: f32[1,1], index: 4, kind: input, shape index: {}]   ;;  %s1000_s5 = inlined_call_operand.vmem [shape: f32[40,1], index: 5, kind: output, shape index: {}]  }
   0x1   :  { %v10_v0 = vstv %s999_s4 }
   0x2   :  { %11 = vst [vmem:[#allocation2] sm:$0x1] %v10_v0 }
   0x3   :  { %s904_s20 = smov 0   ;;  %s906_s21 = smov 0  }
   0x4   :  { %s908_s22 = smov 0  }
   0x5 LB: > { %s917_s4 = sadd.s32 4294967295, %s836_s22   ;;  %s919_s23 = sadd.s32 1, %s836_s22   ;;  %s836_s22 = sphi %s908_s22, %s1004_s22   ;;  %s832_s21 = sphi %s906_s21, %s1003_s21   ;;  %s828_s20 = sphi %s904_s20, %s1002_s20  }
   0x6   : > { %s131_s24 = ssub.s32 %s836_s22, %s919_s23  ;;  %s134_s25 = sadd.s32 1, %s832_s21 }
   0x7   : > { %p132_p0 = scmp.eq.s32.totalorder %s131_s24, 0  ;;  %p144_p1 = scmp.ne.s32.totalorder %s832_s21, %s828_s20 }
   0x8   : > { %p145_p2 = scmp.eq.s32.totalorder %s917_s4, 1  ;;  %p630_p3 = scmp.ge.s32.totalorder %s836_s22, 1 }
   0x9   : > { %s927_s26 = scalar_select %p132_p0, %s832_s21, %s134_s25  }
   0xa   : > { %p929_p4 = por %p145_p2, %p144_p1  ;;  %p198_p5 = scmp.lt.s32.totalorder %s836_s22, 3 }
   0xc   : > { %p199_p6 = pnand %p630_p3, %p198_p5 }
   0xd   : > { %v758_v1 = vld [vmem:[%s996_s1] sm:$0xff] (!%p199_p6)   ;;  %s937_s30 = smul.u32 (!%p199_p6), 3, %s917_s4  ;;  %v759_v2 = vld [vmem:[%s996_s1 + $0x8] sm:$0xff] (!%p199_p6)   ;;  %vm277_vm0 = vcmask (!%p199_p6), 261120   ;;  %s870_s15 = smov (!%p199_p6), 112   ;;  %vm378_vm1 = vcmask (!%p199_p6), 130048  }
   0xe   : > { %202 = sbr.rel (%p199_p6) target bundleno = 604 (0x25c), region = 40  ;;  %659 = vmatprep.subr.bf16.mxu0 (!%p199_p6), %v758_v1  ;;  %v632_v8 = vld [vmem:[%s997_s2] ss:$0 sm:$0xff] (!%p199_p6)  ;;  %s226_s18 = sand.u32 (!%p199_p6), 1, %s828_s20   ;;  %vm398_vm2 = vcmask (!%p199_p6), 7168  }
   0xf   : > { %p234_p7 = scmp.lt.s32.totalorder (!%p199_p6), %s937_s30, 4  ;;  %660 = vmatpush3.bf16.msra.mxu0 (!%p199_p6), %v758_v1  ;;  %v640_v30 = vld [vmem:[%s998_s3] ss:$0 sm:$0xff] (!%p199_p6)  ;;  %s667_s19 = smul.u32 (!%p199_p6), 24, %s226_s18 }
  0x10   : > { %661 = vmatprep.subr.bf16.mxu0 (!%p199_p6), %v759_v2  ;;  %v641_v44 = vld [vmem:[#allocation2] ss:$0 sm:$0xff] (!%p199_p6) }
  0x11   : > { %s954_s22 = scalar_lea.vmem (!%p199_p6), [#allocation3], %s667_s19  }
  0x13   : > { %662 = vmatpush3.bf16.msra.mxu0 (!%p199_p6), %v759_v2 }
  0x15   : > { %s235_s8 = scalar_select %p234_p7, %s937_s30, 4 }
  0x16   : > { %s410_s20 = ssub.s32 (%p929_p4), 5, %s937_s30  ;;  %s654_s24 = smul.u32 (%p929_p4), 24, %s917_s4 }
  0x17   : > { %s631_s9 = sshll.u32 %s235_s8, 3  ;;  %p411_p8 = scmp.lt.s32.totalorder (%p929_p4), %s410_s20, 3 }
  0x18   : > { %s237_s12 = scalar_lea.vmem %s995_s0, %s631_s9  ;;  %s966_s29 = scalar_lea.vmem (%p929_p4), %s1000_s5, %s654_s24  }
  0x19   : > { %v249_v3 = vld [vmem:[%s237_s12] sm:$0xff]  ;;  %v250_v4 = vld [vmem:[%s237_s12 + $0x8] sm:$0xff]  ;;  %v251_v5 = vld [vmem:[%s237_s12 + $0x10] sm:$0xff] }
  0x1a   : > { %v252_v6 = vpack.c.bf16 %v250_v4, %v249_v3  ;;  %v253_v7 = vpack.c.bf16 %v251_v5, %v251_v5 }
  0x1c   : > { %663 = vmatprep.mubr.msk.bf16.mxu0 %vm277_vm0, %v252_v6 }
  0x1d   : > { %664 = vmatmul.mubr.msk.bf16.vlgmr.msra.gmra.mrb[0].mxu0 %vm277_vm0, %v253_v7 }
  0xf0   : > { %v665_v9 = vpop.f32.mrb[0].mxu0 }
  0xf1   : > { %v327_v10 = vadd.f32 %v665_v9, %v632_v8  ;;  %v318_v11 = vpop.f32.mrb[1].mxu0 }
  0xf2   : > { %v319_v12 = vadd.f32 %v632_v8, %v318_v11  ;;  %v666_v13 = vpop.f32.mrb[2].mxu0 }
  0xf3   : > { %v639_v14 = vmul.f32 -1.442695, %v327_v10  ;;  %v321_v15 = vpop.f32.mrb[3].mxu0 }
  0xf4   : > { %v637_v16 = vmul.f32 -1.442695, %v319_v12  ;;  %v322_v17 = vadd.f32 %v632_v8, %v321_v15 }
  0xf5   : > { %760 = vpow2.f32 %v639_v14 }
  0xf6   : > { %762 = vpow2.f32 %v637_v16  ;;  %v638_v18 = vmul.f32 -1.442695, %v322_v17 }
  0xf8   : > { %764 = vpow2.f32 %v638_v18 }
  0xff   : > { %v761_v19 = vpop.eup %760 }
 0x100   : > { %v763_v20 = vpop.eup %762  ;;  %v346_v21 = vadd.f32 1.0, %v761_v19 }
 0x101   : > { %v344_v22 = vadd.f32 1.0, %v763_v20 }
 0x102   : > { %v765_v23 = vpop.eup %764  ;;  %766 = vrcp.f32 %v346_v21 }
 0x103   : > { %768 = vrcp.f32 %v344_v22  ;;  %v345_v24 = vadd.f32 1.0, %v765_v23 }
 0x105   : > { %770 = vrcp.f32 %v345_v24 }
 0x106   : > { %772 = vtanh.f32 %v319_v12 }
 0x107   : > { %774 = vtanh.f32 %v327_v10 }
 0x108   : > { %776 = vtanh.f32 %v322_v17 }
 0x10c   : > { %v767_v25 = vpop.eup %766 }
 0x10d   : > { %v769_v26 = vpop.eup %768  ;;  %360 = vrot.lane.b32.xlu1 %v767_v25, %s870_s15 }
 0x10e   : > { %356 = vrot.lane.b32.xlu0 %v769_v26, %s870_s15 }
 0x10f   : > { %v771_v27 = vpop.eup %770 }
 0x110   : > { %v773_v28 = vpop.eup %772 }
 0x111   : > { %v775_v33 = vpop.eup %774 }
 0x112   : > { %358 = vrot.lane.b32.xlu0 %v771_v27, %s870_s15  ;;  %v777_v35 = vpop.eup %776 }
 0x17f   : > { %v361_v32 = vpop.permute.xlu1 %360 }
 0x180   : > { %v357_v29 = vpop.permute.xlu0 %356  ;;  %v367_v37 = vmul.f32 %v775_v33, %v361_v32 }
 0x181   : > { %v365_v31 = vmul.f32 %v773_v28, %v357_v29 }
 0x182   : > { %v377_v42 = vmul.f32 %v640_v30, %v367_v37 }
 0x183   : > { %v375_v34 = vmul.f32 %v640_v30, %v365_v31 }
 0x184   : > { %v359_v36 = vpop.permute.xlu0 %358  ;;  %v385_v43 = vsel %vm378_vm1, %v377_v42, 0.0 }
 0x185   : > { %v366_v38 = vmul.f32 %v777_v35, %v359_v36  ;;  %v379_v39 = vsel %vm378_vm1, %v375_v34, 0.0 }
 0x186   : > { %380 = vadd.xlane.f32.xlu1 %v379_v39 }
 0x187   : > { %v376_v40 = vmul.f32 %v640_v30, %v366_v38 }
 0x189   : > { %v382_v41 = vsel %vm378_vm1, %v376_v40, 0.0 }
 0x18a   : > { %383 = vadd.xlane.f32.xlu0 %v382_v41 }
 0x18e   : > { %386 = vadd.xlane.f32.xlu0 %v385_v43 }
 0x213   : > { %v381_v45 = vpop.xlane.xlu1 %380 }
 0x214   : > { %v395_v46 = vadd.f32 %v641_v44, %v381_v45 }
 0x216   : > { %399 = vst.msk [vmem:[%s954_s22] sm:$0xff] %vm398_vm2, %v395_v46 }
 0x217   : > { %v384_v47 = vpop.xlane.xlu0 %383 }
 0x218   : > { %v396_v48 = vadd.f32 %v641_v44, %v384_v47  ;;  %408 = sbr.rel (!%p929_p4) target bundleno = 604 (0x25c), region = 44 }
 0x21a   : > { %400 = vst.msk [vmem:[%s954_s22 + $0x8] sm:$0xff] %vm398_vm2, %v396_v48 }
 0x21b   : > { %v387_v49 = vpop.xlane.xlu0 %386 }
 0x21c   : > { %v397_v50 = vadd.f32 %v641_v44, %v387_v49 }
 0x21e   : > { %401 = vst.msk [vmem:[%s954_s22 + $0x10] sm:$0xff] %vm398_vm2, %v397_v50 }
 0x21f   : > { %s1006_s20 = smov (!%p411_p8, %s410_s20), 3 }
 0x220   : > { %s642_s6 = sshll.u32 %s1006_s20, 7 }
 0x221   : > { %p645_p9 = scmp.eq.s32.totalorder %s642_s6, 0 }
 0x222   : > { %778 = sdivrem.u32 (!%p645_p9), %s1006_s20, 3 }
 0x223   : > { %419 = sbr.rel (%p645_p9) target bundleno = 604 (0x25c), region = 48 }
 0x22b   : > { %s972_s27 = spop.drf %778 }
 0x22c   : > { %p646_p10 = scmp.le.s32.totalorder %s972_s27, 0 }
 0x22d   : > { %s838_s4 = smov (!%p646_p10), %s966_s29   ;;  %s842_s30 = smov (!%p646_p10), %s954_s22  }
 0x22e   : > { %583 = sbr.rel (%p646_p10) target bundleno = 575 (0x23f), region = 124  ;;  %s846_s7 = smov (!%p646_p10), 0  }
 0x22f   : > { %s850_s8 = smov (!%p646_p10), 0  }
 0x235 LB: >> { %v487_v51 = vld [vmem:[%s844_s30] sm:$0xff]  ;;  %v489_v52 = vld [vmem:[%s844_s30 + $0x8] sm:$0xff]  ;;  %v491_v53 = vld [vmem:[%s844_s30 + $0x10] sm:$0xff]  ;;  %s493_s9 = sadd.s32 1, %s848_s7  ;;  %s481_s8 = sadd.s32 1, %s852_s8   ;;  %s852_s8 = sphi %s850_s8, %s481_s8   ;;  %s848_s7 = sphi %s846_s7, %s847_s7   ;;  %s844_s30 = sphi %s842_s30, %s498_s30   ;;  %s840_s4 = sphi %s838_s4, %s499_s4  }
 0x236   : >> { %488 = vst [vmem:[%s840_s4] sm:$0xff] %v487_v51  ;;  %490 = vst [vmem:[%s840_s4 + $0x8] sm:$0xff] %v489_v52  ;;  %p494_p11 = scmp.ge.s32.totalorder %s493_s9, %s972_s27  ;;  %p480_p12 = scmp.ge.s32.totalorder %s481_s8, %s972_s27 }
 0x237   : >> { %492 = vst [vmem:[%s840_s4 + $0x10] sm:$0xff] %v491_v53 }
 0x238   : >> { %s1008_s9 = smov (%p494_p11, %s493_s9), 0  ;;  %483 = sbr.rel (!%p480_p12) target bundleno = 565 (0x235), region = 130 }
 0x239   : >> { %s496_s10 = smul.u32 24, %s1008_s9  ;;  %s847_s7 = smov %s1008_s9  }
 0x23b   : >> { %s498_s30 = scalar_lea.vmem %s954_s22, %s496_s10 [#allocation3]   ;;  %s499_s4 = scalar_lea.vmem %s966_s29, %s496_s10  }
 0x23f PF: > { %780 = sdivrem.u32 %s1006_s20, 3 }
 0x240   : > { %s647_s11 = smul.u32 24, %s972_s27 }
 0x242   : > { %s504_s12 = scalar_lea.vmem %s954_s22, %s647_s11 [#allocation3]   ;;  %s506_s13 = scalar_lea.vmem %s966_s29, %s647_s11  }
 0x248   : > { %s781_s14 = spop.drf %780 }
 0x249   : > { %p649_p13 = scmp.le.s32.totalorder %s781_s14, 0 }
 0x24a   : > { %s854_s15 = smov (!%p649_p13), %s506_s13   ;;  %s858_s16 = smov (!%p649_p13), %s504_s12  }
 0x24b   : > { %597 = sbr.rel (%p649_p13) target bundleno = 604 (0x25c), region = 135  ;;  %s862_s17 = smov (!%p649_p13), 0  }
 0x24c   : > { %s866_s18 = smov (!%p649_p13), 0  }
 0x252 LB: >> { %v516_v54 = vld [vmem:[%s860_s16] sm:$0xff]  ;;  %s518_s19 = sadd.s32 1, %s864_s17  ;;  %s510_s18 = sadd.s32 1, %s868_s18   ;;  %s868_s18 = sphi %s866_s18, %s510_s18   ;;  %s864_s17 = sphi %s862_s17, %s863_s17   ;;  %s860_s16 = sphi %s858_s16, %s523_s16   ;;  %s856_s15 = sphi %s854_s15, %s524_s15  }
 0x253   : >> { %517 = vst [vmem:[%s856_s15] sm:$0xff] %v516_v54  ;;  %p519_p0 = scmp.ge.s32.totalorder %s518_s19, %s781_s14  ;;  %p509_p1 = scmp.ge.s32.totalorder %s510_s18, %s781_s14 }
 0x255   : >> { %s1010_s19 = smov (%p519_p0, %s518_s19), 0  ;;  %512 = sbr.rel (!%p509_p1) target bundleno = 594 (0x252), region = 141 }
 0x256   : >> { %s650_s22 = sshll.u32 %s1010_s19, 3  ;;  %s863_s17 = smov %s1010_s19  }
 0x257   : >> { %s523_s16 = scalar_lea.vmem %s504_s12, %s650_s22 [#allocation3]   ;;  %s524_s15 = scalar_lea.vmem %s506_s13, %s650_s22  }
 0x25c PF: > { %p14_p2 = scmp.ge.s32.totalorder %s919_s23, 4   ;;  %s1002_s20 = smov %s832_s21 }
 0x25d   : > { %s1003_s21 = smov %s927_s26  ;;  %s1004_s22 = smov %s919_s23 }
 0x25e   :  { %16 = sbr.rel (!%p14_p2) target bundleno = 5 (0x5), region = 152 }

</bundles_post_ra>
